<compile_context>
chip_gen: v5e
topology: v5e:2x2
jax: 0.10.0
libtpu: 0.0.40
codegen_flags: <defaults>
</compile_context>

<pallas_src>
import math

import jax
import jax.numpy as jnp
from jax.experimental import pallas as pl
from jax.experimental.pallas import tpu as pltpu

# ----------------- configuration (small, consistent with the module) ---------
N_POSES = 21                    # SMPL body joints used by DPoser
POSE_DIM = 6                    # rot_rep = 'rot6d'
DATA_DIM = N_POSES * POSE_DIM   # 126
DATA_PAD = 128                  # lane-padded feature width
HIDDEN_DIM = 64                 # config.model.HIDDEN_DIM (small)
EMBED_DIM = 32                  # config.model.EMBED_DIM (small)
HALF_EMBED = EMBED_DIM // 2
N_BLOCKS = 2                    # config.model.N_BLOCKS
N_GROUPS = 32                   # nn.GroupNorm(32, hidden_dim)
GROUP_SIZE = HIDDEN_DIM // N_GROUPS     # == 2 (enables the var == c^2 identity)
BATCH = 8                       # demo batch_size
BETA_MIN = 0.1                  # VPSDE beta_min
BETA_MAX = 20.0                 # VPSDE beta_max
SDE_T = 1.0                     # VPSDE.T
SDE_N = 500                     # args.sde_N
FOURIER_SCALE = 16.0            # GaussianFourierProjection scale
GN_EPS = 1e-5                   # GroupNorm eps (PyTorch default)

# ------------------------- packed-slab layout (static) -----------------------
# Weight slab (bf16, (448, 128)).  Only activation-path matrices live here; the
# t-only time-embedding matrices are consumed in the wrapper.  Every matrix that
# feeds a GroupNorm is pre-multiplied on the right by (I - P), where P is the
# group-mean pooling matrix, so its output is already mean-centered.
# Row offsets are multiples of 16 so bf16 (16,128) sublane tiles never straddle.
W_WPRE = (0, DATA_PAD, HIDDEN_DIM)                                 # pre_dense (GN-folded)
W_WD1 = ((128, HIDDEN_DIM, HIDDEN_DIM), (256, HIDDEN_DIM, HIDDEN_DIM))   # b{i}_dense1
W_WD2 = ((192, HIDDEN_DIM, HIDDEN_DIM), (320, HIDDEN_DIM, HIDDEN_DIM))   # b{i}_dense2
W_WPOST = (384, HIDDEN_DIM, DATA_PAD)                              # post_dense (126->128 cols)
W_ROWS = 448

# Vector slab (f32, (24, 128)), one row per vector, zero-padded to 128 lanes.
# Bias rows already include the GN fold and (per call) the temb contribution.
V_BPRE = 0        # (bpre + bpret + temb@Wpret) @ (I-P)        (64)
V_GPRE_G = 1      # pre GN gamma                                (64)
V_GPRE_B = 2      # pre GN beta                                 (64)
V_BLK0 = 3        # 6 rows per block: [b1, g1_g, g1_b, b2, g2_g, g2_b]
V_BPOST = 15      # post bias                                   (128, pads 0)
V_NORM_A = 16     # alpha * 2/(max-min)                         (128, pads 0)
V_NORM_B = 17     # alpha * (-2*min/(max-min) - 1)              (128, pads 0)
V_STD = 18        # std broadcast across all lanes
V_ROWS = 24


# --------------------------------- kernel ------------------------------------
def dposer_kernel(act_ref, w_ref, v_ref, out_ref):
    f32 = jnp.float32
    bf16 = jnp.bfloat16

    def wmat(spec):
        o, r, c = spec
        return w_ref[o:o + r, 0:c]                      # bf16 weight tile (lane-aligned)

    def vrow(row, cols):
        return v_ref[row:row + 1, 0:cols]               # (1, cols) f32 row

    def dense(a, spec, brow, bcols):
        # bf16 MXU matmul, f32 accumulate; bias is already GN-folded (+ temb part).
        return (jnp.dot(a.astype(bf16), wmat(spec), preferred_element_type=f32)
                + vrow(brow, bcols))

    def gn_silu(c, grow):
        # GroupNorm(32, 64) with GROUP_SIZE == 2: (I - pool) is folded into the
        # producing dense layer, so `c` is already (x - group_mean), and the biased
        # group variance equals c*c exactly.  Pure VPU/EUP — zero MXU/XLU work.
        y = (c * jax.lax.rsqrt(c * c + GN_EPS) * vrow(grow, HIDDEN_DIM)
             + vrow(grow + 1, HIDDEN_DIM))
        return y * jax.nn.sigmoid(y)                    # SiLU (dropout = identity, eval)

    x6d = act_ref[0]                                    # (Bt, 128) rot6d poses (padded)
    z = act_ref[1]                                      # (Bt, 128) noise       (padded)

    # min-max normalize (alpha pre-folded) + VPSDE marginal_prob perturbation.
    x_t = (x6d * vrow(V_NORM_A, DATA_PAD) + vrow(V_NORM_B, DATA_PAD)
           + z * vrow(V_STD, DATA_PAD))

    # pre_dense (+ pre_dense_t folded) -> GroupNorm -> SiLU
    h = gn_silu(dense(x_t, W_WPRE, V_BPRE, HIDDEN_DIM), V_GPRE_G)

    # residual blocks (static unroll)
    for i in range(N_BLOCKS):
        base = V_BLK0 + 6 * i
        h1 = gn_silu(dense(h, W_WD1[i], base, HIDDEN_DIM), base + 1)
        h2 = gn_silu(dense(h1, W_WD2[i], base + 3, HIDDEN_DIM), base + 4)
        h = h + h2

    # post_dense -> eps prediction.  x0 - x0_hat == (std/alpha) * (eps_pred - z);
    # the scalar factor and SNR weight / batch are applied in the wrapper.
    eps_pred = dense(h, W_WPOST, V_BPOST, DATA_PAD)
    d = eps_pred - z                                    # pad lanes are exactly 0
    out_ref[...] = d * d                                # lane/sublane-dense store


# ------------------------------- JAX glue -------------------------------------
def axis_angle_to_rot6d(aa):
    """(N, 3) axis-angle -> (N, 6) rot6d (first two rows of the rotation matrix)."""
    angle = jnp.sqrt(jnp.sum(aa * aa, axis=-1, keepdims=True))     # (N, 1)
    axis = aa / jnp.maximum(angle, 1e-8)
    x, y, z = axis[:, 0], axis[:, 1], axis[:, 2]
    zeros = jnp.zeros_like(x)
    k = jnp.stack([zeros, -z, y, z, zeros, -x, -y, x, zeros], axis=-1).reshape(-1, 3, 3)
    eye = jnp.eye(3, dtype=aa.dtype)[None]
    s = jnp.sin(angle)[..., None]
    c = jnp.cos(angle)[..., None]
    rot = eye + s * k + (1.0 - c) * jnp.matmul(k, k)
    return rot[:, :2, :].reshape(-1, 6)


def init_params(key):
    """Deterministic synthetic parameters (shapes from ScoreModelFC / Posenormalizer)."""
    ks = iter(jax.random.split(key, 40))

    def dense(fan_in, shape):
        return jax.random.normal(next(ks), shape, jnp.float32) * (1.0 / math.sqrt(fan_in))

    p = {}
    span = 0.5 + jax.random.uniform(next(ks), (1, DATA_DIM), jnp.float32)
    p['minp'] = -span
    p['maxp'] = span
    p['wf'] = jax.random.normal(next(ks), (1, HALF_EMBED), jnp.float32) * FOURIER_SCALE
    p['wte'] = dense(EMBED_DIM, (EMBED_DIM, EMBED_DIM))
    p['bte'] = dense(EMBED_DIM, (1, EMBED_DIM))
    p['wpre'] = dense(DATA_DIM, (DATA_DIM, HIDDEN_DIM))
    p['bpre'] = dense(DATA_DIM, (1, HIDDEN_DIM))
    p['wpret'] = dense(EMBED_DIM, (EMBED_DIM, HIDDEN_DIM))
    p['bpret'] = dense(EMBED_DIM, (1, HIDDEN_DIM))
    p['gpre_g'] = jnp.ones((1, HIDDEN_DIM), jnp.float32)
    p['gpre_b'] = jnp.zeros((1, HIDDEN_DIM), jnp.float32)
    p['wd1'] = dense(HIDDEN_DIM, (N_BLOCKS, HIDDEN_DIM, HIDDEN_DIM))
    p['bd1'] = dense(HIDDEN_DIM, (N_BLOCKS, 1, HIDDEN_DIM))
    p['wd1t'] = dense(EMBED_DIM, (N_BLOCKS, EMBED_DIM, HIDDEN_DIM))
    p['bd1t'] = dense(EMBED_DIM, (N_BLOCKS, 1, HIDDEN_DIM))
    p['g1_g'] = jnp.ones((N_BLOCKS, 1, HIDDEN_DIM), jnp.float32)
    p['g1_b'] = jnp.zeros((N_BLOCKS, 1, HIDDEN_DIM), jnp.float32)
    p['wd2'] = dense(HIDDEN_DIM, (N_BLOCKS, HIDDEN_DIM, HIDDEN_DIM))
    p['bd2'] = dense(HIDDEN_DIM, (N_BLOCKS, 1, HIDDEN_DIM))
    p['wd2t'] = dense(EMBED_DIM, (N_BLOCKS, EMBED_DIM, HIDDEN_DIM))
    p['bd2t'] = dense(EMBED_DIM, (N_BLOCKS, 1, HIDDEN_DIM))
    p['g2_g'] = jnp.ones((N_BLOCKS, 1, HIDDEN_DIM), jnp.float32)
    p['g2_b'] = jnp.zeros((N_BLOCKS, 1, HIDDEN_DIM), jnp.float32)
    p['wpost'] = dense(HIDDEN_DIM, (HIDDEN_DIM, DATA_DIM))
    p['bpost'] = dense(HIDDEN_DIM, (1, DATA_DIM))
    return p


def pack_params(p):
    """Pack parameters into a bf16 weight slab + f32 vector-slab base + aux pieces.

    The GroupNorm centering map (I - P) is t-independent and linear, so it is
    folded here into every pre-GN dense weight / bias — the kernel never pools.
    """
    f32 = jnp.float32
    pad_feat = DATA_PAD - DATA_DIM

    gm = (jnp.arange(HIDDEN_DIM)[:, None] // GROUP_SIZE
          == jnp.arange(N_GROUPS)[None, :]).astype(f32)          # (H, G) one-hot
    pool = jnp.dot(gm, gm.T) / GROUP_SIZE                        # (H, H) group-mean
    ipool = jnp.eye(HIDDEN_DIM, dtype=f32) - pool                # centering map

    wslab = jnp.zeros((W_ROWS, 128), f32)

    def put(slab, spec, mat):
        o, r, c = spec
        assert mat.shape == (r, c), (mat.shape, spec)
        return slab.at[o:o + r, 0:c].set(mat.astype(f32))

    wslab = put(wslab, W_WPRE, jnp.pad(p['wpre'], ((0, pad_feat), (0, 0))) @ ipool)
    for i in range(N_BLOCKS):
        wslab = put(wslab, W_WD1[i], p['wd1'][i] @ ipool)
        wslab = put(wslab, W_WD2[i], p['wd2'][i] @ ipool)
    wslab = put(wslab, W_WPOST, jnp.pad(p['wpost'], ((0, 0), (0, pad_feat))))

    vbase = jnp.zeros((V_ROWS, 128), f32)

    def putv(slab, row, vec):
        vec = jnp.asarray(vec, f32).reshape(-1)
        return slab.at[row, 0:vec.shape[0]].set(vec)

    vbase = putv(vbase, V_BPRE, (p['bpre'] + p['bpret']) @ ipool)
    vbase = putv(vbase, V_GPRE_G, p['gpre_g'])
    vbase = putv(vbase, V_GPRE_B, p['gpre_b'])
    for i in range(N_BLOCKS):
        base = V_BLK0 + 6 * i
        vbase = putv(vbase, base, (p['bd1'][i] + p['bd1t'][i]) @ ipool)
        vbase = putv(vbase, base + 1, p['g1_g'][i])
        vbase = putv(vbase, base + 2, p['g1_b'][i])
        vbase = putv(vbase, base + 3, (p['bd2'][i] + p['bd2t'][i]) @ ipool)
        vbase = putv(vbase, base + 4, p['g2_g'][i])
        vbase = putv(vbase, base + 5, p['g2_b'][i])
    vbase = putv(vbase, V_BPOST, jnp.pad(p['bpost'].reshape(-1), (0, pad_feat)))

    # min-max normalizer folded to x*a + b (alpha is multiplied in per call).
    a = (2.0 / (p['maxp'] - p['minp'])).reshape(-1)
    b = (-2.0 * p['minp'] / (p['maxp'] - p['minp']) - 1.0).reshape(-1)
    norm_a = jnp.pad(a, (0, pad_feat))
    norm_b = jnp.pad(b, (0, pad_feat))

    wf = p['wf'].reshape(-1)
    aux = dict(
        wf2=jnp.concatenate([wf, wf]).reshape(1, EMBED_DIM),          # sin/cos fuse
        phase=jnp.concatenate([jnp.zeros((HALF_EMBED,), f32),
                               jnp.full((HALF_EMBED,), math.pi / 2, f32)]
                              ).reshape(1, EMBED_DIM),
        wte=p['wte'], bte=p['bte'],
        wpret_f=p['wpret'] @ ipool,
        wd1t_f=jnp.stack([p['wd1t'][i] @ ipool for i in range(N_BLOCKS)]),
        wd2t_f=jnp.stack([p['wd2t'][i] @ ipool for i in range(N_BLOCKS)]),
        norm_a=norm_a, norm_b=norm_b,
    )

    # Pad-lane invariant: lanes >= DATA_DIM of everything that can reach the
    # summed loss must be exactly zero (a real checkpoint load must keep this).
    o, r, _ = W_WPOST
    assert float(jnp.max(jnp.abs(wslab[o:o + r, DATA_DIM:DATA_PAD]))) == 0.0
    assert float(jnp.max(jnp.abs(vbase[V_BPOST, DATA_DIM:DATA_PAD]))) == 0.0
    assert float(jnp.max(jnp.abs(norm_a[DATA_DIM:]))) == 0.0
    assert float(jnp.max(jnp.abs(norm_b[DATA_DIM:]))) == 0.0

    return wslab.astype(jnp.bfloat16), vbase, aux


def _pick_b_tile(b):
    """Largest multiple-of-8 tile (<=512) dividing b; for b>=256 keep >=2 grid
    steps so ("parallel",) shards across megacore / v7x's two TensorCores."""
    assert b % 8 == 0, "batch must be a multiple of 8"
    cap = min(b, 512)
    if b >= 256:
        cap = min(cap, b // 2)
    bt = 8
    for cand in range(8, cap + 1, 8):
        if b % cand == 0:
            bt = cand
    return bt


def dposer_forward(poses, betas, quan_t, packed, z):
    """Mirrors DPoser.forward(poses, betas, quan_t) -> prior_loss (scalar).

    `betas` is accepted for API parity but unused (the pose prior ignores shape).
    `z` replaces torch.randn_like(x_0) so the script is deterministic.
    """
    del betas
    wslab, vbase, aux = packed
    b = poses.shape[0]
    b_tile = _pick_b_tile(b)
    num_tiles = b // b_tile
    pad_feat = DATA_PAD - DATA_DIM
    f32 = jnp.float32

    # axis-angle -> rot6d (pure data prep, plain JAX), lane-padded to 128.
    aa = poses[:, :N_POSES * 3].reshape(-1, 3)
    x6d = axis_angle_to_rot6d(aa).reshape(b, DATA_DIM).astype(f32)
    x6d_p = jnp.pad(x6d, ((0, 0), (0, pad_feat)))
    z_p = jnp.pad(z.astype(f32), ((0, 0), (0, pad_feat)))
    act = jnp.stack([x6d_p, z_p], axis=0)                          # (2, B, 128)

    # --- scalar SDE math, hoisted out of the kernel (t is a single value) ---
    timesteps = jnp.linspace(SDE_T, 0.001, SDE_N, dtype=f32)
    t = timesteps[quan_t]
    lmc = -0.25 * t * t * (BETA_MAX - BETA_MIN) - 0.5 * t * BETA_MIN
    alpha = jnp.exp(lmc)
    std = jnp.sqrt(1.0 - jnp.exp(2.0 * lmc))
    k2 = std / alpha                         # x0 - x0_hat = k2 * (eps_pred - z)
    snr = alpha / std
    coef = 0.5 * jnp.sqrt(1.0 + snr) / b * k2 * k2

    # --- time-embedding branch (t-only), hoisted out of the kernel ---
    # sin/cos fused: [sin(c*W) | cos(c*W)] == sin(c*[W|W] + [0|pi/2]).
    # TODO(synk): 2*pi*log(t*999) mirrors the v2 kernel's continuous-VPSDE labels;
    # if the checkpointed model feeds the raw label (t*999), drop the log here.
    c_four = 2.0 * math.pi * jnp.log(t * 999.0)
    sincos = jnp.sin(c_four * aux['wf2'] + aux['phase'])           # (1, 32)
    temb = sincos @ aux['wte'] + aux['bte']
    temb = temb * jax.nn.sigmoid(temb)                             # SiLU

    # Per-call vector slab: temb rows folded into the (GN-folded) bias rows,
    # alpha folded into the normalizer FMA, std broadcast into its own row.
    vslab = vbase
    vslab = vslab.at[V_BPRE, 0:HIDDEN_DIM].add((temb @ aux['wpret_f'])[0])
    for i in range(N_BLOCKS):
        base = V_BLK0 + 6 * i
        vslab = vslab.at[base, 0:HIDDEN_DIM].add((temb @ aux['wd1t_f'][i])[0])
        vslab = vslab.at[base + 3, 0:HIDDEN_DIM].add((temb @ aux['wd2t_f'][i])[0])
    vslab = vslab.at[V_NORM_A, :].set(alpha * aux['norm_a'])
    vslab = vslab.at[V_NORM_B, :].set(alpha * aux['norm_b'])
    vslab = vslab.at[V_STD, :].set(std)

    grid_spec = pltpu.PrefetchScalarGridSpec(
        num_scalar_prefetch=0,
        grid=(num_tiles,),
        in_specs=[
            pl.BlockSpec((2, b_tile, DATA_PAD), lambda i: (0, i, 0)),   # activations
            pl.BlockSpec((W_ROWS, 128), lambda i: (0, 0)),              # bf16 weights
            pl.BlockSpec((V_ROWS, 128), lambda i: (0, 0)),              # f32 vectors
        ],
        out_specs=pl.BlockSpec((b_tile, DATA_PAD), lambda i: (i, 0)),   # dense (Bt,128)
    )
    out = pl.pallas_call(
        dposer_kernel,
        out_shape=jax.ShapeDtypeStruct((b, DATA_PAD), f32),
        grid_spec=grid_spec,
        compiler_params=pltpu.CompilerParams(
            dimension_semantics=("parallel",)),                    # megacore / v7x 2-TC
    )(act, wslab, vslab)

    # loss = sum(weight * (x0 - x0_hat)^2) / batch == coef * sum((eps_pred - z)^2)
    return coef * jnp.sum(out)


if __name__ == "__main__":
    key = jax.random.PRNGKey(0)
    kparam, kpose, kbeta, kz = jax.random.split(key, 4)

    # TODO(synk): checkpoint / config / EMA loading replaced by synthetic params.
    params = init_params(kparam)
    packed = pack_params(params)
    poses = jax.random.normal(kpose, (BATCH, N_POSES * 3), jnp.float32) * 0.3
    betas = jax.random.normal(kbeta, (BATCH, 10), jnp.float32)
    z = jax.random.normal(kz, (BATCH, DATA_DIM), jnp.float32)
    quan_t = 100

    loss = dposer_forward(poses, betas, quan_t, packed, z)
    loss = jax.block_until_ready(loss)
    assert bool(jnp.isfinite(loss)), f"non-finite loss: {loss}"
    print("KERNEL_OK")
</pallas_src>

<mosaic_0001>
module attributes {stable_mosaic.version = 11 : i64} {
  func.func @dposer_kernel(%arg0: i32, %arg1: memref<2x8x128xf32, #tpu.memory_space<vmem>>, %arg2: memref<448x128xbf16, #tpu.memory_space<vmem>>, %arg3: memref<24x128xf32, #tpu.memory_space<vmem>>, %arg4: memref<8x128xf32, #tpu.memory_space<vmem>>) attributes {dimension_semantics = [#tpu.dimension_semantics<parallel>], iteration_bounds = array<i64: 1>, scalar_prefetch = 0 : i64, scratch_operands = 0 : i64, tpu.core_type = #tpu.core_type<tc>, window_params = [{transform_indices = @transform_0, window_bounds = array<i64: 2, 8, 128>}, {pipeline_mode = #tpu.pipeline_mode<synchronous>, transform_indices = @transform_1, window_bounds = array<i64: 448, 128>}, {pipeline_mode = #tpu.pipeline_mode<synchronous>, transform_indices = @transform_2, window_bounds = array<i64: 24, 128>}, {transform_indices = @transform_3, window_bounds = array<i64: 8, 128>}]} {
    %c0 = arith.constant 0 : index
    %c0_0 = arith.constant 0 : index
    %c0_1 = arith.constant 0 : index
    %0 = vector.load %arg1[%c0, %c0_0, %c0_1] : memref<2x8x128xf32, #tpu.memory_space<vmem>>, vector<1x8x128xf32>
    %1 = vector.shape_cast %0 : vector<1x8x128xf32> to vector<8x128xf32>
    %c1 = arith.constant 1 : index
    %c0_2 = arith.constant 0 : index
    %c0_3 = arith.constant 0 : index
    %2 = vector.load %arg1[%c1, %c0_2, %c0_3] : memref<2x8x128xf32, #tpu.memory_space<vmem>>, vector<1x8x128xf32>
    %3 = vector.shape_cast %2 : vector<1x8x128xf32> to vector<8x128xf32>
    %c16 = arith.constant 16 : index
    %c0_4 = arith.constant 0 : index
    %4 = vector.load %arg3[%c16, %c0_4] : memref<24x128xf32, #tpu.memory_space<vmem>>, vector<1x128xf32>
    %5 = vector.broadcast %4 : vector<1x128xf32> to vector<8x128xf32>
    %6 = arith.mulf %1, %5 : vector<8x128xf32>
    %c17 = arith.constant 17 : index
    %c0_5 = arith.constant 0 : index
    %7 = vector.load %arg3[%c17, %c0_5] : memref<24x128xf32, #tpu.memory_space<vmem>>, vector<1x128xf32>
    %8 = vector.broadcast %7 : vector<1x128xf32> to vector<8x128xf32>
    %9 = arith.addf %6, %8 : vector<8x128xf32>
    %c18 = arith.constant 18 : index
    %c0_6 = arith.constant 0 : index
    %10 = vector.load %arg3[%c18, %c0_6] : memref<24x128xf32, #tpu.memory_space<vmem>>, vector<1x128xf32>
    %11 = vector.broadcast %10 : vector<1x128xf32> to vector<8x128xf32>
    %12 = arith.mulf %3, %11 : vector<8x128xf32>
    %13 = arith.addf %9, %12 : vector<8x128xf32>
    %14 = arith.truncf %13 : vector<8x128xf32> to vector<8x128xbf16>
    %c0_7 = arith.constant 0 : index
    %c0_8 = arith.constant 0 : index
    %15 = vector.load %arg2[%c0_7, %c0_8] : memref<448x128xbf16, #tpu.memory_space<vmem>>, vector<128x64xbf16>
    %cst = arith.constant dense<0.000000e+00> : vector<8x64xf32>
    %16 = tpu.matmul %14, %15, %cst {dimension_numbers = #tpu.dot_dimension_numbers<[1], [0], [0], [1], [0, 0, 1, 1], [], []>} : vector<8x128xbf16>, vector<128x64xbf16>, vector<8x64xf32> -> vector<8x64xf32>
    %c0_9 = arith.constant 0 : index
    %c0_10 = arith.constant 0 : index
    %17 = vector.load %arg3[%c0_9, %c0_10] : memref<24x128xf32, #tpu.memory_space<vmem>>, vector<1x64xf32>
    %18 = vector.broadcast %17 : vector<1x64xf32> to vector<8x64xf32>
    %19 = arith.addf %16, %18 : vector<8x64xf32>
    %20 = arith.mulf %19, %19 : vector<8x64xf32>
    %cst_11 = arith.constant 9.99999974E-6 : f32
    %21 = vector.broadcast %cst_11 : f32 to vector<8x64xf32>
    %22 = arith.addf %20, %21 : vector<8x64xf32>
    %23 = math.rsqrt %22 : vector<8x64xf32>
    %24 = arith.mulf %19, %23 : vector<8x64xf32>
    %c1_12 = arith.constant 1 : index
    %c0_13 = arith.constant 0 : index
    %25 = vector.load %arg3[%c1_12, %c0_13] : memref<24x128xf32, #tpu.memory_space<vmem>>, vector<1x64xf32>
    %26 = vector.broadcast %25 : vector<1x64xf32> to vector<8x64xf32>
    %27 = arith.mulf %24, %26 : vector<8x64xf32>
    %c2 = arith.constant 2 : index
    %c0_14 = arith.constant 0 : index
    %28 = vector.load %arg3[%c2, %c0_14] : memref<24x128xf32, #tpu.memory_space<vmem>>, vector<1x64xf32>
    %29 = vector.broadcast %28 : vector<1x64xf32> to vector<8x64xf32>
    %30 = arith.addf %27, %29 : vector<8x64xf32>
    %31 = arith.negf %30 : vector<8x64xf32>
    %32 = math.exp %31 : vector<8x64xf32>
    %cst_15 = arith.constant 1.000000e+00 : f32
    %33 = vector.broadcast %cst_15 : f32 to vector<8x64xf32>
    %34 = arith.addf %33, %32 : vector<8x64xf32>
    %35 = arith.divf %33, %34 : vector<8x64xf32>
    %36 = arith.mulf %30, %35 : vector<8x64xf32>
    %37 = arith.truncf %36 : vector<8x64xf32> to vector<8x64xbf16>
    %c128 = arith.constant 128 : index
    %c0_16 = arith.constant 0 : index
    %38 = vector.load %arg2[%c128, %c0_16] : memref<448x128xbf16, #tpu.memory_space<vmem>>, vector<64x64xbf16>
    %cst_17 = arith.constant dense<0.000000e+00> : vector<8x64xf32>
    %39 = tpu.matmul %37, %38, %cst_17 {dimension_numbers = #tpu.dot_dimension_numbers<[1], [0], [0], [1], [0, 0, 1, 1], [], []>} : vector<8x64xbf16>, vector<64x64xbf16>, vector<8x64xf32> -> vector<8x64xf32>
    %c3 = arith.constant 3 : index
    %c0_18 = arith.constant 0 : index
    %40 = vector.load %arg3[%c3, %c0_18] : memref<24x128xf32, #tpu.memory_space<vmem>>, vector<1x64xf32>
    %41 = vector.broadcast %40 : vector<1x64xf32> to vector<8x64xf32>
    %42 = arith.addf %39, %41 : vector<8x64xf32>
    %43 = arith.mulf %42, %42 : vector<8x64xf32>
    %cst_19 = arith.constant 9.99999974E-6 : f32
    %44 = vector.broadcast %cst_19 : f32 to vector<8x64xf32>
    %45 = arith.addf %43, %44 : vector<8x64xf32>
    %46 = math.rsqrt %45 : vector<8x64xf32>
    %47 = arith.mulf %42, %46 : vector<8x64xf32>
    %c4 = arith.constant 4 : index
    %c0_20 = arith.constant 0 : index
    %48 = vector.load %arg3[%c4, %c0_20] : memref<24x128xf32, #tpu.memory_space<vmem>>, vector<1x64xf32>
    %49 = vector.broadcast %48 : vector<1x64xf32> to vector<8x64xf32>
    %50 = arith.mulf %47, %49 : vector<8x64xf32>
    %c5 = arith.constant 5 : index
    %c0_21 = arith.constant 0 : index
    %51 = vector.load %arg3[%c5, %c0_21] : memref<24x128xf32, #tpu.memory_space<vmem>>, vector<1x64xf32>
    %52 = vector.broadcast %51 : vector<1x64xf32> to vector<8x64xf32>
    %53 = arith.addf %50, %52 : vector<8x64xf32>
    %54 = arith.negf %53 : vector<8x64xf32>
    %55 = math.exp %54 : vector<8x64xf32>
    %cst_22 = arith.constant 1.000000e+00 : f32
    %56 = vector.broadcast %cst_22 : f32 to vector<8x64xf32>
    %57 = arith.addf %56, %55 : vector<8x64xf32>
    %58 = arith.divf %56, %57 : vector<8x64xf32>
    %59 = arith.mulf %53, %58 : vector<8x64xf32>
    %60 = arith.truncf %59 : vector<8x64xf32> to vector<8x64xbf16>
    %c192 = arith.constant 192 : index
    %c0_23 = arith.constant 0 : index
    %61 = vector.load %arg2[%c192, %c0_23] : memref<448x128xbf16, #tpu.memory_space<vmem>>, vector<64x64xbf16>
    %cst_24 = arith.constant dense<0.000000e+00> : vector<8x64xf32>
    %62 = tpu.matmul %60, %61, %cst_24 {dimension_numbers = #tpu.dot_dimension_numbers<[1], [0], [0], [1], [0, 0, 1, 1], [], []>} : vector<8x64xbf16>, vector<64x64xbf16>, vector<8x64xf32> -> vector<8x64xf32>
    %c6 = arith.constant 6 : index
    %c0_25 = arith.constant 0 : index
    %63 = vector.load %arg3[%c6, %c0_25] : memref<24x128xf32, #tpu.memory_space<vmem>>, vector<1x64xf32>
    %64 = vector.broadcast %63 : vector<1x64xf32> to vector<8x64xf32>
    %65 = arith.addf %62, %64 : vector<8x64xf32>
    %66 = arith.mulf %65, %65 : vector<8x64xf32>
    %cst_26 = arith.constant 9.99999974E-6 : f32
    %67 = vector.broadcast %cst_26 : f32 to vector<8x64xf32>
    %68 = arith.addf %66, %67 : vector<8x64xf32>
    %69 = math.rsqrt %68 : vector<8x64xf32>
    %70 = arith.mulf %65, %69 : vector<8x64xf32>
    %c7 = arith.constant 7 : index
    %c0_27 = arith.constant 0 : index
    %71 = vector.load %arg3[%c7, %c0_27] : memref<24x128xf32, #tpu.memory_space<vmem>>, vector<1x64xf32>
    %72 = vector.broadcast %71 : vector<1x64xf32> to vector<8x64xf32>
    %73 = arith.mulf %70, %72 : vector<8x64xf32>
    %c8 = arith.constant 8 : index
    %c0_28 = arith.constant 0 : index
    %74 = vector.load %arg3[%c8, %c0_28] : memref<24x128xf32, #tpu.memory_space<vmem>>, vector<1x64xf32>
    %75 = vector.broadcast %74 : vector<1x64xf32> to vector<8x64xf32>
    %76 = arith.addf %73, %75 : vector<8x64xf32>
    %77 = arith.negf %76 : vector<8x64xf32>
    %78 = math.exp %77 : vector<8x64xf32>
    %cst_29 = arith.constant 1.000000e+00 : f32
    %79 = vector.broadcast %cst_29 : f32 to vector<8x64xf32>
    %80 = arith.addf %79, %78 : vector<8x64xf32>
    %81 = arith.divf %79, %80 : vector<8x64xf32>
    %82 = arith.mulf %76, %81 : vector<8x64xf32>
    %83 = arith.addf %36, %82 : vector<8x64xf32>
    %84 = arith.truncf %83 : vector<8x64xf32> to vector<8x64xbf16>
    %c256 = arith.constant 256 : index
    %c0_30 = arith.constant 0 : index
    %85 = vector.load %arg2[%c256, %c0_30] : memref<448x128xbf16, #tpu.memory_space<vmem>>, vector<64x64xbf16>
    %cst_31 = arith.constant dense<0.000000e+00> : vector<8x64xf32>
    %86 = tpu.matmul %84, %85, %cst_31 {dimension_numbers = #tpu.dot_dimension_numbers<[1], [0], [0], [1], [0, 0, 1, 1], [], []>} : vector<8x64xbf16>, vector<64x64xbf16>, vector<8x64xf32> -> vector<8x64xf32>
    %c9 = arith.constant 9 : index
    %c0_32 = arith.constant 0 : index
    %87 = vector.load %arg3[%c9, %c0_32] : memref<24x128xf32, #tpu.memory_space<vmem>>, vector<1x64xf32>
    %88 = vector.broadcast %87 : vector<1x64xf32> to vector<8x64xf32>
    %89 = arith.addf %86, %88 : vector<8x64xf32>
    %90 = arith.mulf %89, %89 : vector<8x64xf32>
    %cst_33 = arith.constant 9.99999974E-6 : f32
    %91 = vector.broadcast %cst_33 : f32 to vector<8x64xf32>
    %92 = arith.addf %90, %91 : vector<8x64xf32>
    %93 = math.rsqrt %92 : vector<8x64xf32>
    %94 = arith.mulf %89, %93 : vector<8x64xf32>
    %c10 = arith.constant 10 : index
    %c0_34 = arith.constant 0 : index
    %95 = vector.load %arg3[%c10, %c0_34] : memref<24x128xf32, #tpu.memory_space<vmem>>, vector<1x64xf32>
    %96 = vector.broadcast %95 : vector<1x64xf32> to vector<8x64xf32>
    %97 = arith.mulf %94, %96 : vector<8x64xf32>
    %c11 = arith.constant 11 : index
    %c0_35 = arith.constant 0 : index
    %98 = vector.load %arg3[%c11, %c0_35] : memref<24x128xf32, #tpu.memory_space<vmem>>, vector<1x64xf32>
    %99 = vector.broadcast %98 : vector<1x64xf32> to vector<8x64xf32>
    %100 = arith.addf %97, %99 : vector<8x64xf32>
    %101 = arith.negf %100 : vector<8x64xf32>
    %102 = math.exp %101 : vector<8x64xf32>
    %cst_36 = arith.constant 1.000000e+00 : f32
    %103 = vector.broadcast %cst_36 : f32 to vector<8x64xf32>
    %104 = arith.addf %103, %102 : vector<8x64xf32>
    %105 = arith.divf %103, %104 : vector<8x64xf32>
    %106 = arith.mulf %100, %105 : vector<8x64xf32>
    %107 = arith.truncf %106 : vector<8x64xf32> to vector<8x64xbf16>
    %c320 = arith.constant 320 : index
    %c0_37 = arith.constant 0 : index
    %108 = vector.load %arg2[%c320, %c0_37] : memref<448x128xbf16, #tpu.memory_space<vmem>>, vector<64x64xbf16>
    %cst_38 = arith.constant dense<0.000000e+00> : vector<8x64xf32>
    %109 = tpu.matmul %107, %108, %cst_38 {dimension_numbers = #tpu.dot_dimension_numbers<[1], [0], [0], [1], [0, 0, 1, 1], [], []>} : vector<8x64xbf16>, vector<64x64xbf16>, vector<8x64xf32> -> vector<8x64xf32>
    %c12 = arith.constant 12 : index
    %c0_39 = arith.constant 0 : index
    %110 = vector.load %arg3[%c12, %c0_39] : memref<24x128xf32, #tpu.memory_space<vmem>>, vector<1x64xf32>
    %111 = vector.broadcast %110 : vector<1x64xf32> to vector<8x64xf32>
    %112 = arith.addf %109, %111 : vector<8x64xf32>
    %113 = arith.mulf %112, %112 : vector<8x64xf32>
    %cst_40 = arith.constant 9.99999974E-6 : f32
    %114 = vector.broadcast %cst_40 : f32 to vector<8x64xf32>
    %115 = arith.addf %113, %114 : vector<8x64xf32>
    %116 = math.rsqrt %115 : vector<8x64xf32>
    %117 = arith.mulf %112, %116 : vector<8x64xf32>
    %c13 = arith.constant 13 : index
    %c0_41 = arith.constant 0 : index
    %118 = vector.load %arg3[%c13, %c0_41] : memref<24x128xf32, #tpu.memory_space<vmem>>, vector<1x64xf32>
    %119 = vector.broadcast %118 : vector<1x64xf32> to vector<8x64xf32>
    %120 = arith.mulf %117, %119 : vector<8x64xf32>
    %c14 = arith.constant 14 : index
    %c0_42 = arith.constant 0 : index
    %121 = vector.load %arg3[%c14, %c0_42] : memref<24x128xf32, #tpu.memory_space<vmem>>, vector<1x64xf32>
    %122 = vector.broadcast %121 : vector<1x64xf32> to vector<8x64xf32>
    %123 = arith.addf %120, %122 : vector<8x64xf32>
    %124 = arith.negf %123 : vector<8x64xf32>
    %125 = math.exp %124 : vector<8x64xf32>
    %cst_43 = arith.constant 1.000000e+00 : f32
    %126 = vector.broadcast %cst_43 : f32 to vector<8x64xf32>
    %127 = arith.addf %126, %125 : vector<8x64xf32>
    %128 = arith.divf %126, %127 : vector<8x64xf32>
    %129 = arith.mulf %123, %128 : vector<8x64xf32>
    %130 = arith.addf %83, %129 : vector<8x64xf32>
    %131 = arith.truncf %130 : vector<8x64xf32> to vector<8x64xbf16>
    %c384 = arith.constant 384 : index
    %c0_44 = arith.constant 0 : index
    %132 = vector.load %arg2[%c384, %c0_44] : memref<448x128xbf16, #tpu.memory_space<vmem>>, vector<64x128xbf16>
    %cst_45 = arith.constant dense<0.000000e+00> : vector<8x128xf32>
    %133 = tpu.matmul %131, %132, %cst_45 {dimension_numbers = #tpu.dot_dimension_numbers<[1], [0], [0], [1], [0, 0, 1, 1], [], []>} : vector<8x64xbf16>, vector<64x128xbf16>, vector<8x128xf32> -> vector<8x128xf32>
    %c15 = arith.constant 15 : index
    %c0_46 = arith.constant 0 : index
    %134 = vector.load %arg3[%c15, %c0_46] : memref<24x128xf32, #tpu.memory_space<vmem>>, vector<1x128xf32>
    %135 = vector.broadcast %134 : vector<1x128xf32> to vector<8x128xf32>
    %136 = arith.addf %133, %135 : vector<8x128xf32>
    %137 = arith.subf %136, %3 : vector<8x128xf32>
    %138 = arith.mulf %137, %137 : vector<8x128xf32>
    %c0_47 = arith.constant 0 : index
    %c0_48 = arith.constant 0 : index
    %139 = vector.load %arg4[%c0_47, %c0_48] : memref<8x128xf32, #tpu.memory_space<vmem>>, vector<8x128xf32>
    tpu.vector_store %arg4[%c0_47, %c0_48], %138 {strides = array<i32>} : memref<8x128xf32, #tpu.memory_space<vmem>>, vector<8x128xf32>,
    return
  }
  func.func @transform_0(%arg0: i32) -> (i32, i32, i32) {
    %c0_i32 = arith.constant 0 : i32
    %c0_i32_0 = arith.constant 0 : i32
    %c0_i32_1 = arith.constant 0 : i32
    return %c0_i32, %arg0, %c0_i32_0 : i32, i32, i32
  }
  func.func @transform_1(%arg0: i32) -> (i32, i32) {
    %c0_i32 = arith.constant 0 : i32
    %c0_i32_0 = arith.constant 0 : i32
    %c0_i32_1 = arith.constant 0 : i32
    return %c0_i32, %c0_i32_0 : i32, i32
  }
  func.func @transform_2(%arg0: i32) -> (i32, i32) {
    %c0_i32 = arith.constant 0 : i32
    %c0_i32_0 = arith.constant 0 : i32
    %c0_i32_1 = arith.constant 0 : i32
    return %c0_i32, %c0_i32_0 : i32, i32
  }
  func.func @transform_3(%arg0: i32) -> (i32, i32) {
    %c0_i32 = arith.constant 0 : i32
    %c0_i32_0 = arith.constant 0 : i32
    return %arg0, %c0_i32 : i32, i32
  }
}

</mosaic_0001>

<bundles_post_ra>
// kernel: tpu_custom_call.1
= control target key start
LH: loop header
LB: loop body
LE: loop exit
PB: predicated region body
PF: predicated region fallthrough
CT: control target
= control target key end

     0   :  { %8 = vsyncpa [#allocation3], 0  ;;  %s998_s0 = inlined_call_operand.hbm [shape: f32[2,8,128], index: 0, kind: input, shape index: {}]   ;;  %s999_s1 = inlined_call_operand.hbm [shape: bf16[448,128], index: 1, kind: input, shape index: {}]   ;;  %s1000_s2 = inlined_call_operand.hbm [shape: f32[24,128], index: 2, kind: input, shape index: {}]   ;;  %s1001_s3 = inlined_call_operand.hbm [shape: f32[8,128], index: 3, kind: output, shape index: {}]  }
   0x1   :  { %9 = vsyncpa [#allocation6], 0  ;;  %s28_s14 = sshll.u32 %s999_s1, 4  ;;  %s29_s14 = int_to_ptr.hbm [resolvable:$true] %s28_s14 }
   0x2   :  { %10 = vsyncpa [#allocation4], 0  ;;  %s939_s15 = smov [#allocation5]   ;;  %s15_s19 = sshll.u32 %s998_s0, 4  ;;  %s16_s19 = int_to_ptr.hbm [resolvable:$true] %s15_s19 }
   0x3   :  { %s30_s16 = sshll.u32 %s939_s15, 4  ;;  %s940_s20 = smov 64   ;;  %s31_s16 = int_to_ptr.vmem [resolvable:$true] %s30_s16 }
   0x4   :  { %s941_s21 = smov 4   ;;  %s942_s22 = smov [#allocation2]  }
   0x5   :  { %36 = dma.hbm_to_vmem [thread:$0]  %s29_s14, 3584, %s31_s16, [#allocation6], %s940_s20, %s940_s20, %s941_s21  }
   0x6   :  { %s17_s23 = sshll.u32 %s942_s22, 4  ;;  %s943_s24 = smov 128   ;;  %s18_s23 = int_to_ptr.vmem [resolvable:$true] %s17_s23 }
   0x7   :  { %s944_s25 = smov 8   ;;  %s41_s27 = sshll.u32 %s1000_s2, 4  ;;  %s42_s27 = int_to_ptr.hbm [resolvable:$true] %s41_s27 }
   0x8   :  { %23 = dma.hbm_to_vmem [thread:$0]  %s16_s19, 256, %s18_s23, [#allocation3], %s943_s24, %s943_s24, %s944_s25  }
   0x9   :  { %s945_s28 = smov [#allocation7]  }
   0xa   :  { %s43_s29 = sshll.u32 %s945_s28, 4  ;;  %s44_s29 = int_to_ptr.vmem [resolvable:$true] %s43_s29 }
   0xb   :  { %49 = dma.hbm_to_vmem [thread:$0]  %s42_s27, 384, %s44_s29, [#allocation6], %s943_s24, %s943_s24, %s944_s25  }
   0xc   :  { %933 = dma.done.wait [#allocation3], 256  }
   0xd   :  { %934 = vsyncadd [#allocation3], 4294967040 }
   0xe   :  { %935 = dma.done.wait [#allocation6], 3968  }
   0xf   :  { %936 = vsyncadd [#allocation6], 4294963328  ;;  %v759_v0 = vld [vmem:[#allocation5 + $0x38] sm:$0xff]  ;;  %v758_v1 = vld [vmem:[#allocation5 + $0x30] sm:$0xff]  ;;  %vm230_vm7 = vcmask 523264   ;;  %s946_s0 = smov [#allocation8]  }
  0x10   :  { %143 = vmatpush.bf16.msra.mxu0 %v759_v0  ;;  %v757_v2 = vld [vmem:[#allocation5 + $0x28] sm:$0xff]  ;;  %v756_v3 = vld [vmem:[#allocation5 + $0x20] sm:$0xff]  ;;  %v788_v4 = vld [vmem:[#allocation7 + $0x10] ss:$0 sm:$0xff]  ;;  %s617_s2 = sshll.u32 %s946_s0, 4  ;;  %s619_s5 = sshll.u32 %s1001_s3, 4  ;;  %s618_s2 = int_to_ptr.vmem [resolvable:$true] %s617_s2  ;;  %s620_s5 = int_to_ptr.hbm [resolvable:$true] %s619_s5 }
  0x11   :  { %v755_v5 = vld [vmem:[#allocation5 + $0x18] sm:$0xff]  ;;  %v63_v6 = vld [vmem:[#allocation2] sm:$0xff]  ;;  %v753_v14 = vld [vmem:[#allocation5 + $0x8] sm:$0xff] }
  0x12   :  { %v68_v7 = vmul.f32 %v788_v4, %v63_v6  ;;  %v789_v8 = vld [vmem:[#allocation7 + $0x11] ss:$0 sm:$0xff]  ;;  %v790_v9 = vld [vmem:[#allocation7 + $0x12] ss:$0 sm:$0xff]  ;;  %v976_v11 = vld [vmem:[#allocation2 + $0x8] sm:$0xff] }
  0x13   :  { %v754_v10 = vld [vmem:[#allocation5 + $0x10] sm:$0xff]  ;;  %v74_v13 = vmul.f32 %v790_v9, %v976_v11  ;;  %v752_v16 = vld [vmem:[#allocation5] sm:$0xff]  ;;  %v763_v24 = vld [vmem:[#allocation5 + $0x58] sm:$0xff] }
  0x14   :  { %144 = vmatpush.bf16.msra.mxu0 %v758_v1  ;;  %v71_v12 = vadd.f32 %v789_v8, %v68_v7  ;;  %v791_v18 = vld [vmem:[#allocation7] ss:$0 sm:$0xff]  ;;  %238 = vmatpush.bf16.msra.mxu1 %v763_v24  ;;  %v762_v25 = vld [vmem:[#allocation5 + $0x50] sm:$0xff]  ;;  %v761_v29 = vld [vmem:[#allocation5 + $0x48] sm:$0xff] }
  0x15   :  { %v760_v32 = vld [vmem:[#allocation5 + $0x40] sm:$0xff]  ;;  %v767_v55 = vld [vmem:[#allocation5 + $0x78] sm:$0xff]  ;;  %v766_v57 = vld [vmem:[#allocation5 + $0x70] sm:$0xff] }
  0x16   :  { %v75_v15 = vadd.f32 %v74_v13, %v71_v12  ;;  %v792_v34 = vld [vmem:[#allocation7 + $0x1] ss:$0 sm:$0xff]  ;;  %v793_v37 = vld [vmem:[#allocation7 + $0x2] ss:$0 sm:$0xff]  ;;  %v794_v56 = vld [vmem:[#allocation7 + $0x3] ss:$0 sm:$0xff]  ;;  %328 = vmatpush.bf16.msra.mxu2 %v767_v55 }
  0x17   :  { %v765_v60 = vld [vmem:[#allocation5 + $0x68] sm:$0xff]  ;;  %v764_v63 = vld [vmem:[#allocation5 + $0x60] sm:$0xff] }
  0x18   :  { %145 = vmatpush.bf16.msra.mxu0 %v757_v2  ;;  %v76_v17 = vpack.c.bf16 %v75_v15, %v75_v15  ;;  %239 = vmatpush.bf16.msra.mxu1 %v762_v25  ;;  %v795_v7 = vld [vmem:[#allocation7 + $0x4] ss:$0 sm:$0xff] }
  0x1a   :  { %329 = vmatpush.bf16.msra.mxu2 %v766_v57 }
  0x1c   :  { %146 = vmatpush.bf16.msra.mxu0 %v756_v3  ;;  %240 = vmatpush.bf16.msra.mxu1 %v761_v29  ;;  %v797_v29 = vld [vmem:[#allocation7 + $0x6] ss:$0 sm:$0xff] }
  0x1e   :  { %330 = vmatpush.bf16.msra.mxu2 %v765_v60 }
  0x20   :  { %147 = vmatpush.bf16.msra.mxu0 %v755_v5  ;;  %241 = vmatpush.bf16.msra.mxu1 %v760_v32 }
  0x22   :  { %331 = vmatpush.bf16.msra.mxu2 %v764_v63 }
  0x24   :  { %148 = vmatpush.bf16.msra.mxu0 %v754_v10  ;;  %v796_v10 = vld [vmem:[#allocation7 + $0x5] ss:$0 sm:$0xff] }
  0x28   :  { %149 = vmatpush.bf16.msra.mxu0 %v753_v14 }
  0x2c   :  { %150 = vmatpush.bf16.msra.mxu0 %v752_v16 }
  0x2f   :  { %151 = vmatmul.bf16.vlgmr.msra.gmra.mxu0 %v76_v17 }
  0xac   :  { %v152_v19 = vpop.f32.mrf.mxu0 }
  0xad   :  { %v153_v20 = vadd.f32 %v791_v18, %v152_v19 }
  0xaf   :  { %v156_v21 = vmul.f32 %v153_v20, %v153_v20 }
  0xb1   :  { %v157_v22 = vadd.f32 1e-05, %v156_v21 }
  0xb3   :  { %807 = vrsqrt.f32 %v157_v22  ;;  %vm164_vm1 = vweird.f32 %v157_v22 }
  0xb4   :  { %v154_v23 = vpop.f32.mrf.mxu0 }
  0xb9   :  { %v808_v26 = vpop.eup %807 }
  0xba   :  { %v159_v27 = vmul.f32 %v808_v26, %v157_v22  ;;  %vm165_vm0 = vweird.f32 %v808_v26 }
  0xbb   :  { %vm166_vm2 = vmor %vm164_vm1, %vm165_vm0 }
  0xbc   :  { %v160_v28 = vmul.f32 %v808_v26, %v159_v27 }
  0xbe   :  { %v161_v30 = vmul.f32 0.5, %v160_v28 }
  0xc0   :  { %v162_v31 = vsub.f32 1.5, %v161_v30 }
  0xc2   :  { %v163_v33 = vmul.f32 %v808_v26, %v162_v31 }
  0xc4   :  { %v167_v35 = vsel %vm166_vm2, %v808_v26, %v163_v33 }
  0xc5   :  { %v168_v36 = vmul.f32 %v167_v35, %v153_v20  ;;  %v771_v35 = vld [vmem:[#allocation5 + $0x98] sm:$0xff] }
  0xc6   :  { %419 = vmatpush.bf16.msra.mxu3 %v771_v35 }
  0xc7   :  { %v171_v38 = vmul.f32 %v792_v34, %v168_v36  ;;  %v770_v36 = vld [vmem:[#allocation5 + $0x90] sm:$0xff] }
  0xc9   :  { %v174_v39 = vadd.f32 %v793_v37, %v171_v38 }
  0xca   :  { %420 = vmatpush.bf16.msra.mxu3 %v770_v36 }
  0xcb   :  { %v662_v40 = vmul.f32 -1.442695, %v174_v39 }
  0xcd   :  { %809 = vpow2.f32 %v662_v40  ;;  %v769_v40 = vld [vmem:[#allocation5 + $0x88] sm:$0xff] }
  0xce   :  { %421 = vmatpush.bf16.msra.mxu3 %v769_v40 }
  0xd3   :  { %v810_v41 = vpop.eup %809 }
  0xd4   :  { %v178_v42 = vadd.f32 1.0, %v810_v41 }
  0xd6   :  { %811 = vrcp.f32 %v178_v42  ;;  %v190_v46 = vand.u32 2147483648, %v178_v42  ;;  %v188_v48 = vand.u32 2147483647, %v178_v42  ;;  %vm184_vm4 = vweird.f32 %v178_v42 }
  0xd8   :  { %v191_v50 = vor.u32 1.1754944e-38, %v190_v46  ;;  %vm189_vm6 = vcmp.eq.f32.partialorder %v188_v48, 8.507059e+37  ;;  %v799_v48 = vld [vmem:[#allocation7 + $0x8] ss:$0 sm:$0xff] }
  0xdc   :  { %v812_v43 = vpop.eup %811 }
  0xdd   :  { %v180_v44 = vmul.f32 %v812_v43, %v178_v42  ;;  %vm185_vm3 = vweird.f32 %v812_v43 }
  0xde   :  { %vm186_vm5 = vmor %vm184_vm4, %vm185_vm3 }
  0xdf   :  { %v181_v45 = vsub.f32 1.0, %v180_v44 }
  0xe1   :  { %v182_v47 = vmul.f32 %v812_v43, %v181_v45  ;;  %v798_v45 = vld [vmem:[#allocation7 + $0x7] ss:$0 sm:$0xff] }
  0xe3   :  { %v183_v49 = vadd.f32 %v812_v43, %v182_v47 }
  0xe5   :  { %v187_v51 = vsel %vm186_vm5, %v812_v43, %v183_v49  ;;  %v768_v43 = vld [vmem:[#allocation5 + $0x80] sm:$0xff] }
  0xe6   :  { %v192_v52 = vsel %vm189_vm6, %v191_v50, %v187_v51  ;;  %422 = vmatpush.bf16.msra.mxu3 %v768_v43 }
  0xe7   :  { %v979_v53 = vmul.f32 %v192_v52, %v174_v39 }
  0xe9   :  { %v195_v54 = vpack.c.bf16 %v979_v53, %v979_v53 }
  0xeb   :  { %679 = vmatmul.msk.bf16.vlgmr.msra.gmra.mxu1 %vm230_vm7, %v195_v54 }
 0x168   :  { %v243_v58 = vpop.f32.mrf.mxu1 }
 0x169   :  { %v244_v59 = vadd.f32 %v794_v56, %v243_v58 }
 0x16b   :  { %v247_v61 = vmul.f32 %v244_v59, %v244_v59 }
 0x16d   :  { %v248_v62 = vadd.f32 1e-05, %v247_v61 }
 0x16f   :  { %813 = vrsqrt.f32 %v248_v62  ;;  %vm255_vm9 = vweird.f32 %v248_v62 }
 0x170   :  { %v245_v0 = vpop.f32.mrf.mxu1 }
 0x175   :  { %v814_v1 = vpop.eup %813 }
 0x176   :  { %v250_v2 = vmul.f32 %v814_v1, %v248_v62  ;;  %vm256_vm8 = vweird.f32 %v814_v1 }
 0x177   :  { %vm257_vm10 = vmor %vm255_vm9, %vm256_vm8 }
 0x178   :  { %v251_v3 = vmul.f32 %v814_v1, %v250_v2 }
 0x17a   :  { %v252_v4 = vmul.f32 0.5, %v251_v3 }
 0x17c   :  { %v253_v5 = vsub.f32 1.5, %v252_v4  ;;  %v800_v4 = vld [vmem:[#allocation7 + $0x9] ss:$0 sm:$0xff] }
 0x17e   :  { %v254_v6 = vmul.f32 %v814_v1, %v253_v5 }
 0x180   :  { %v258_v8 = vsel %vm257_vm10, %v814_v1, %v254_v6 }
 0x181   :  { %v259_v9 = vmul.f32 %v258_v8, %v244_v59 }
 0x183   :  { %v262_v12 = vmul.f32 %v795_v7, %v259_v9 }
 0x185   :  { %v265_v13 = vadd.f32 %v796_v10, %v262_v12  ;;  %v775_v10 = vld [vmem:[#allocation5 + $0xb8] sm:$0xff]  ;;  %v774_v12 = vld [vmem:[#allocation5 + $0xb0] sm:$0xff] }
 0x186   :  { %509 = vmatpush.bf16.msrb.mxu1 %v775_v10 }
 0x187   :  { %v680_v14 = vmul.f32 -1.442695, %v265_v13 }
 0x189   :  { %815 = vpow2.f32 %v680_v14 }
 0x18a   :  { %510 = vmatpush.bf16.msrb.mxu1 %v774_v12 }
 0x18f   :  { %v816_v15 = vpop.eup %815 }
 0x190   :  { %v269_v16 = vadd.f32 1.0, %v816_v15 }
 0x192   :  { %817 = vrcp.f32 %v269_v16  ;;  %v281_v20 = vand.u32 2147483648, %v269_v16  ;;  %v279_v22 = vand.u32 2147483647, %v269_v16  ;;  %vm275_vm12 = vweird.f32 %v269_v16 }
 0x194   :  { %v282_v24 = vor.u32 1.1754944e-38, %v281_v20  ;;  %vm280_vm14 = vcmp.eq.f32.partialorder %v279_v22, 8.507059e+37  ;;  %v801_v20 = vld [vmem:[#allocation7 + $0xa] ss:$0 sm:$0xff] }
 0x198   :  { %v818_v17 = vpop.eup %817 }
 0x199   :  { %v271_v18 = vmul.f32 %v818_v17, %v269_v16  ;;  %vm276_vm11 = vweird.f32 %v818_v17 }
 0x19a   :  { %vm277_vm13 = vmor %vm275_vm12, %vm276_vm11 }
 0x19b   :  { %v272_v19 = vsub.f32 1.0, %v271_v18  ;;  %v772_v18 = vld [vmem:[#allocation5 + $0xa0] sm:$0xff] }
 0x19d   :  { %v273_v21 = vmul.f32 %v818_v17, %v272_v19 }
 0x19f   :  { %v274_v23 = vadd.f32 %v818_v17, %v273_v21 }
 0x1a1   :  { %v278_v25 = vsel %vm277_vm13, %v818_v17, %v274_v23  ;;  %v802_v23 = vld [vmem:[#allocation7 + $0xb] ss:$0 sm:$0xff] }
 0x1a2   :  { %v283_v26 = vsel %vm280_vm14, %v282_v24, %v278_v25 }
 0x1a3   :  { %v285_v27 = vmul.f32 %v283_v26, %v265_v13 }
 0x1a5   :  { %v286_v28 = vpack.c.bf16 %v285_v27, %v285_v27 }
 0x1a7   :  { %697 = vmatmul.msk.bf16.vlgmr.msra.gmra.mxu2 %vm230_vm7, %v286_v28 }
 0x22a   :  { %v333_v30 = vpop.f32.mrf.mxu2 }
 0x22b   :  { %v334_v31 = vadd.f32 %v797_v29, %v333_v30 }
 0x22d   :  { %v337_v32 = vmul.f32 %v334_v31, %v334_v31 }
 0x22f   :  { %v338_v33 = vadd.f32 1e-05, %v337_v32 }
 0x231   :  { %819 = vrsqrt.f32 %v338_v33  ;;  %vm345_vm0 = vweird.f32 %v338_v33 }
 0x232   :  { %v335_v34 = vpop.f32.mrf.mxu2 }
 0x237   :  { %v820_v37 = vpop.eup %819 }
 0x238   :  { %v340_v38 = vmul.f32 %v820_v37, %v338_v33  ;;  %vm346_vm15 = vweird.f32 %v820_v37 }
 0x239   :  { %vm347_vm1 = vmor %vm345_vm0, %vm346_vm15 }
 0x23a   :  { %v341_v39 = vmul.f32 %v820_v37, %v340_v38 }
 0x23c   :  { %v342_v41 = vmul.f32 0.5, %v341_v39 }
 0x23e   :  { %v343_v42 = vsub.f32 1.5, %v342_v41  ;;  %v803_v41 = vld [vmem:[#allocation7 + $0xc] ss:$0 sm:$0xff] }
 0x240   :  { %v344_v44 = vmul.f32 %v820_v37, %v343_v42 }
 0x242   :  { %v348_v46 = vsel %vm347_vm1, %v820_v37, %v344_v44 }
 0x243   :  { %v349_v47 = vmul.f32 %v348_v46, %v334_v31 }
 0x245   :  { %v352_v49 = vmul.f32 %v798_v45, %v349_v47 }
 0x247   :  { %v355_v50 = vadd.f32 %v799_v48, %v352_v49 }
 0x249   :  { %v698_v51 = vmul.f32 -1.442695, %v355_v50 }
 0x24b   :  { %821 = vpow2.f32 %v698_v51 }
 0x251   :  { %v822_v52 = vpop.eup %821 }
 0x252   :  { %v359_v54 = vadd.f32 1.0, %v822_v52 }
 0x254   :  { %823 = vrcp.f32 %v359_v54  ;;  %v371_v58 = vand.u32 2147483648, %v359_v54  ;;  %v369_v60 = vand.u32 2147483647, %v359_v54  ;;  %vm365_vm3 = vweird.f32 %v359_v54 }
 0x256   :  { %v372_v62 = vor.u32 1.1754944e-38, %v371_v58  ;;  %vm370_vm5 = vcmp.eq.f32.partialorder %v369_v60, 8.507059e+37  ;;  %v777_v58 = vld [vmem:[#allocation5 + $0xc8] sm:$0xff] }
 0x257   :  { %v805_v60 = vld [vmem:[#allocation7 + $0xe] ss:$0 sm:$0xff] }
 0x25a   :  { %v824_v55 = vpop.eup %823 }
 0x25b   :  { %v361_v56 = vmul.f32 %v824_v55, %v359_v54  ;;  %vm366_vm2 = vweird.f32 %v824_v55  ;;  %v778_v54 = vld [vmem:[#allocation5 + $0xd0] sm:$0xff] }
 0x25c   :  { %vm367_vm4 = vmor %vm365_vm3, %vm366_vm2 }
 0x25d   :  { %v362_v57 = vsub.f32 1.0, %v361_v56  ;;  %v804_v56 = vld [vmem:[#allocation7 + $0xd] ss:$0 sm:$0xff] }
 0x25f   :  { %v363_v59 = vmul.f32 %v824_v55, %v362_v57 }
 0x261   :  { %v364_v61 = vadd.f32 %v824_v55, %v363_v59 }
 0x263   :  { %v368_v63 = vsel %vm367_vm4, %v824_v55, %v364_v61 }
 0x264   :  { %v373_v0 = vsel %vm370_vm5, %v372_v62, %v368_v63  ;;  %v776_v62 = vld [vmem:[#allocation5 + $0xc0] sm:$0xff] }
 0x265   :  { %v375_v1 = vmul.f32 %v373_v0, %v355_v50  ;;  %v779_v50 = vld [vmem:[#allocation5 + $0xd8] sm:$0xff] }
 0x266   :  { %600 = vmatpush.bf16.msrb.mxu2 %v779_v50 }
 0x267   :  { %v986_v2 = vadd.f32 %v375_v1, %v979_v53  ;;  %v773_v53 = vld [vmem:[#allocation5 + $0xa8] sm:$0xff] }
 0x268   :  { %511 = vmatpush.bf16.msrb.mxu1 %v773_v53 }
 0x269   :  { %v377_v3 = vpack.c.bf16 %v986_v2, %v986_v2 }
 0x26a   :  { %601 = vmatpush.bf16.msrb.mxu2 %v778_v54 }
 0x26b   :  { %715 = vmatmul.msk.bf16.vlgmr.msra.gmra.mxu3 %vm230_vm7, %v377_v3 }
 0x26c   :  { %512 = vmatpush.bf16.msrb.mxu1 %v772_v18 }
 0x26e   :  { %602 = vmatpush.bf16.msrb.mxu2 %v777_v58 }
 0x272   :  { %603 = vmatpush.bf16.msrb.mxu2 %v776_v62 }
 0x2ee   :  { %v424_v5 = vpop.f32.mrf.mxu3 }
 0x2ef   :  { %v425_v6 = vadd.f32 %v800_v4, %v424_v5 }
 0x2f1   :  { %v428_v7 = vmul.f32 %v425_v6, %v425_v6 }
 0x2f3   :  { %v429_v8 = vadd.f32 1e-05, %v428_v7 }
 0x2f5   :  { %825 = vrsqrt.f32 %v429_v8  ;;  %vm436_vm8 = vweird.f32 %v429_v8 }
 0x2f6   :  { %v426_v9 = vpop.f32.mrf.mxu3 }
 0x2fb   :  { %v826_v13 = vpop.eup %825 }
 0x2fc   :  { %v431_v14 = vmul.f32 %v826_v13, %v429_v8  ;;  %vm437_vm6 = vweird.f32 %v826_v13 }
 0x2fd   :  { %vm438_vm9 = vmor %vm436_vm8, %vm437_vm6 }
 0x2fe   :  { %v432_v15 = vmul.f32 %v826_v13, %v431_v14 }
 0x300   :  { %v433_v16 = vmul.f32 0.5, %v432_v15 }
 0x302   :  { %v434_v17 = vsub.f32 1.5, %v433_v16 }
 0x304   :  { %v435_v19 = vmul.f32 %v826_v13, %v434_v17  ;;  %v806_v17 = vld [vmem:[#allocation7 + $0xf] ss:$0 sm:$0xff] }
 0x306   :  { %v439_v21 = vsel %vm438_vm9, %v826_v13, %v435_v19 }
 0x307   :  { %v440_v22 = vmul.f32 %v439_v21, %v425_v6 }
 0x309   :  { %v443_v24 = vmul.f32 %v801_v20, %v440_v22 }
 0x30b   :  { %v446_v25 = vadd.f32 %v802_v23, %v443_v24 }
 0x30d   :  { %v716_v26 = vmul.f32 -1.442695, %v446_v25 }
 0x30f   :  { %827 = vpow2.f32 %v716_v26 }
 0x315   :  { %v828_v27 = vpop.eup %827 }
 0x316   :  { %v450_v28 = vadd.f32 1.0, %v828_v27 }
 0x318   :  { %829 = vrcp.f32 %v450_v28  ;;  %v462_v32 = vand.u32 2147483648, %v450_v28  ;;  %v460_v34 = vand.u32 2147483647, %v450_v28  ;;  %vm456_vm11 = vweird.f32 %v450_v28 }
 0x31a   :  { %v463_v36 = vor.u32 1.1754944e-38, %v462_v32  ;;  %vm461_vm13 = vcmp.eq.f32.partialorder %v460_v34, 8.507059e+37 }
 0x31e   :  { %v830_v29 = vpop.eup %829 }
 0x31f   :  { %v452_v30 = vmul.f32 %v830_v29, %v450_v28  ;;  %vm457_vm10 = vweird.f32 %v830_v29 }
 0x320   :  { %vm458_vm12 = vmor %vm456_vm11, %vm457_vm10 }
 0x321   :  { %v453_v31 = vsub.f32 1.0, %v452_v30 }
 0x323   :  { %v454_v33 = vmul.f32 %v830_v29, %v453_v31 }
 0x325   :  { %v455_v35 = vadd.f32 %v830_v29, %v454_v33 }
 0x327   :  { %v459_v37 = vsel %vm458_vm12, %v830_v29, %v455_v35 }
 0x328   :  { %v464_v38 = vsel %vm461_vm13, %v463_v36, %v459_v37 }
 0x329   :  { %v466_v39 = vmul.f32 %v464_v38, %v446_v25 }
 0x32b   :  { %v467_v40 = vpack.c.bf16 %v466_v39, %v466_v39 }
 0x32d   :  { %733 = vmatmul.msk.bf16.vlgmr.msrb.gmra.mxu1 %vm230_vm7, %v467_v40 }
 0x3aa   :  { %v514_v42 = vpop.f32.mrf.mxu1 }
 0x3ab   :  { %v515_v43 = vadd.f32 %v803_v41, %v514_v42 }
 0x3ad   :  { %v518_v44 = vmul.f32 %v515_v43, %v515_v43 }
 0x3af   :  { %v519_v45 = vadd.f32 1e-05, %v518_v44 }
 0x3b1   :  { %831 = vrsqrt.f32 %v519_v45  ;;  %vm526_vm15 = vweird.f32 %v519_v45 }
 0x3b2   :  { %v516_v46 = vpop.f32.mrf.mxu1 }
 0x3b7   :  { %v832_v47 = vpop.eup %831 }
 0x3b8   :  { %v521_v48 = vmul.f32 %v832_v47, %v519_v45  ;;  %vm527_vm14 = vweird.f32 %v832_v47 }
 0x3b9   :  { %vm528_vm0 = vmor %vm526_vm15, %vm527_vm14 }
 0x3ba   :  { %v522_v49 = vmul.f32 %v832_v47, %v521_v48 }
 0x3bc   :  { %v523_v51 = vmul.f32 0.5, %v522_v49 }
 0x3be   :  { %v524_v52 = vsub.f32 1.5, %v523_v51 }
 0x3c0   :  { %v525_v55 = vmul.f32 %v832_v47, %v524_v52 }
 0x3c2   :  { %v529_v57 = vsel %vm528_vm0, %v832_v47, %v525_v55 }
 0x3c3   :  { %v530_v59 = vmul.f32 %v529_v57, %v515_v43 }
 0x3c5   :  { %v533_v61 = vmul.f32 %v804_v56, %v530_v59 }
 0x3c7   :  { %v536_v63 = vadd.f32 %v805_v60, %v533_v61 }
 0x3c9   :  { %v734_v0 = vmul.f32 -1.442695, %v536_v63 }
 0x3cb   :  { %833 = vpow2.f32 %v734_v0 }
 0x3d1   :  { %v834_v1 = vpop.eup %833 }
 0x3d2   :  { %v540_v3 = vadd.f32 1.0, %v834_v1 }
 0x3d4   :  { %835 = vrcp.f32 %v540_v3  ;;  %v552_v7 = vand.u32 2147483648, %v540_v3  ;;  %v550_v9 = vand.u32 2147483647, %v540_v3  ;;  %vm546_vm2 = vweird.f32 %v540_v3 }
 0x3d6   :  { %v553_v12 = vor.u32 1.1754944e-38, %v552_v7  ;;  %vm551_vm4 = vcmp.eq.f32.partialorder %v550_v9, 8.507059e+37 }
 0x3da   :  { %v836_v4 = vpop.eup %835 }
 0x3db   :  { %v542_v5 = vmul.f32 %v836_v4, %v540_v3  ;;  %vm547_vm1 = vweird.f32 %v836_v4 }
 0x3dc   :  { %vm548_vm3 = vmor %vm546_vm2, %vm547_vm1 }
 0x3dd   :  { %v543_v6 = vsub.f32 1.0, %v542_v5 }
 0x3df   :  { %v544_v8 = vmul.f32 %v836_v4, %v543_v6 }
 0x3e1   :  { %v545_v10 = vadd.f32 %v836_v4, %v544_v8 }
 0x3e3   :  { %v549_v13 = vsel %vm548_vm3, %v836_v4, %v545_v10 }
 0x3e4   :  { %v554_v14 = vsel %vm551_vm4, %v553_v12, %v549_v13 }
 0x3e5   :  { %v556_v15 = vmul.f32 %v554_v14, %v536_v63 }
 0x3e7   :  { %v557_v53 = vadd.f32 %v556_v15, %v986_v2 }
 0x3e9   :  { %v558_v16 = vpack.c.bf16 %v557_v53, %v557_v53 }
 0x3eb   :  { %751 = vmatmul.msk.bf16.vlgmr.msrb.gmra.mxu2 %vm230_vm7, %v558_v16 }
 0x46e   :  { %v605_v18 = vpop.f32.mrf.mxu2 }
 0x46f   :  { %v606_v19 = vadd.f32 %v806_v17, %v605_v18 }
 0x471   :  { %v609_v20 = vsub.f32 %v606_v19, %v976_v11 }
 0x473   :  { %v610_v21 = vmul.f32 %v609_v20, %v609_v20 }
 0x475   :  { %611 = vst [vmem:[#allocation8] sm:$0xff] %v610_v21 }
 0x476   :  { %v607_v22 = vpop.f32.mrf.mxu2  ;;  %622 = dma.vmem_to_hbm [thread:$0]  %s618_s2, 128, %s620_s5, [#allocation4]  }
 0x477   :  { %937 = dma.done.wait [#allocation4], 128  }
 0x478   :  { %938 = vsyncadd [#allocation4], 4294967168 }
 0x479   :  { %627 = vsyncpa [#allocation3], 1 }
 0x47a   :  { %628 = vsyncpa [#allocation6], 1 }
 0x47b   :  { %629 = vsyncpa [#allocation4], 1 }

</bundles_post_ra>
